<compile_context>
chip_gen: v7x
topology: tpu7x:2x2x1
jax: 0.10.0
libtpu: 0.0.40
codegen_flags: <defaults>
</compile_context>

<pallas_src>
import functools

import jax
import jax.numpy as jnp
from jax.experimental import pallas as pl
from jax.experimental.pallas import tpu as pltpu

SUBLANES = 8
LANES = 128
DEFAULT_BLOCK_ROWS = 8192            # 4 MiB per f32 input block per pipeline buffer.
VMEM_LIMIT_BYTES = 48 * 1024 * 1024  # > v5e's 16 MiB scoped default, < every chip's physical VMEM.


def _core_config():
    """Best-effort (tensorcores_per_device, leading-axis dimension semantics)."""
    try:
        kind = jax.devices()[0].device_kind.lower()
    except Exception:
        return 1, "arbitrary"
    if "v4" in kind or "v5p" in kind:
        return 2, "parallel"                       # megacore: documented 'parallel' split
    if ("v7" in kind or "7x" in kind) and hasattr(pltpu, "CORE_PARALLEL"):
        return 2, pltpu.CORE_PARALLEL              # v7x: only CORE_PARALLEL really splits
    return 1, "arbitrary"                          # v5e / v6e: single TensorCore


def _bce_logits_sum(x, t):
    """Sum of BCE-with-logits over a (small) 1-D slab, in f32."""
    xf = x.astype(jnp.float32)
    tf = t.astype(jnp.float32)
    return jnp.sum(jnp.maximum(xf, 0.0) - xf * tf + jnp.log(1.0 + jnp.exp(-jnp.abs(xf))))


def _focal_from_bce_sum(bce_sum, n, alpha, beta):
    bce_mean = bce_sum / jnp.float32(n)
    return alpha * (1.0 - jnp.exp(-bce_mean)) ** beta * bce_mean


def _focal_kernel(x_ref, t_ref, o_ref, *, n_valid_rows, block_rows, blocks_per_core):
    c = pl.program_id(0)          # core-split axis (size 1 on single-TC chips)
    k = pl.program_id(1)          # sequential reduction axis

    @pl.when(k == 0)
    def _init():
        o_ref[...] = jnp.zeros_like(o_ref)

    x = x_ref[...].astype(jnp.float32)
    t = t_ref[...].astype(jnp.float32)

    # BCE with logits, stable softplus form: max(x,0) - x*t + log(1 + exp(-|x|)).
    bce = jnp.maximum(x, 0.0) - x * t + jnp.log(1.0 + jnp.exp(-jnp.abs(x)))

    row_block = c * blocks_per_core + k
    # Needs masking only if this block extends past the valid rows (ragged last
    # block) or is a clamped/replayed block (row_block >= total_blocks).
    is_tail = (row_block + 1) * block_rows > n_valid_rows

    @pl.when(jnp.logical_not(is_tail))
    def _interior():
        # (block_rows,128) -> (block_rows//8, 8, 128): axis-0 sum is pure
        # elementwise VPU adds into the lane/sublane-parallel partial slab.
        o_ref[...] += bce.reshape(-1, SUBLANES, LANES).sum(axis=0)

    @pl.when(is_tail)
    def _tail():
        # Row-level validity mask.  Keep jnp.where (select): garbage rows read
        # past the logical array may be NaN/Inf and must be discarded, not *0.
        row_ids = (jax.lax.broadcasted_iota(jnp.int32, x.shape, 0)
                   + row_block * block_rows)
        masked = jnp.where(row_ids < n_valid_rows, bce, 0.0)
        o_ref[...] += masked.reshape(-1, SUBLANES, LANES).sum(axis=0)


def focal_loss(inputs, targets, alpha=0.8, beta=2.0, block_rows=DEFAULT_BLOCK_ROWS):
    """Pallas implementation of FocalLoss.forward (the `smooth` arg is unused upstream).

    Pass logits/targets in their native dtype (bf16 is fine and halves HBM traffic);
    the kernel upcasts to f32 internally.
    """
    n = inputs.size
    x = inputs.reshape(-1)
    t = targets.reshape(-1)

    n_main = (n // LANES) * LANES
    rows = n_main // LANES

    # Tiny inputs: not worth a DMA pipeline -- do it all in plain JAX.
    if rows < SUBLANES:
        return _focal_from_bce_sum(_bce_logits_sum(x, t), n, alpha, beta)

    if n_main != n:
        # Non-128-aligned input: the kernel streams the aligned prefix; the
        # <=127-element ragged tail is added in the JAX finalize below (no
        # full-tensor pad/fixup pass).
        x_main, t_main = x[:n_main], t[:n_main]
    else:
        x_main, t_main = x, t
    x2 = x_main.reshape(rows, LANES)
    t2 = t_main.reshape(rows, LANES)

    # Shrink the row block for small inputs; always keep it a multiple of 8.
    block_rows = min(block_rows, pl.cdiv(rows, SUBLANES) * SUBLANES)
    block_rows = pl.cdiv(block_rows, SUBLANES) * SUBLANES

    num_cores, core_sem = _core_config()
    total_blocks = pl.cdiv(rows, block_rows)
    if total_blocks < num_cores:
        num_cores = 1                      # nothing to split; avoid replayed-block DMA
    blocks_per_core = pl.cdiv(total_blocks, num_cores)

    if num_cores > 1:
        if isinstance(core_sem, str):
            dim_sems = (core_sem, "arbitrary")
        else:
            dim_sems = (core_sem, pltpu.ARBITRARY)
    else:
        dim_sems = ("arbitrary", "arbitrary")

    def in_map(c, k):
        b = c * blocks_per_core + k
        # Clamp so the DMA never goes past the array; a fully replayed block is
        # zeroed by the in-kernel tail mask.
        return (jnp.minimum(b, total_blocks - 1), 0)

    kernel = functools.partial(
        _focal_kernel,
        n_valid_rows=rows, block_rows=block_rows, blocks_per_core=blocks_per_core)

    partials = pl.pallas_call(
        kernel,
        out_shape=jax.ShapeDtypeStruct((num_cores * SUBLANES, LANES), jnp.float32),
        grid_spec=pltpu.PrefetchScalarGridSpec(
            num_scalar_prefetch=0,
            grid=(num_cores, blocks_per_core),
            in_specs=[
                # TODO(synk): on v7x, sweep pipeline_mode=pl.Buffered(3) here if the
                # profile shows exposed DMA at step boundaries.
                pl.BlockSpec((block_rows, LANES), in_map),
                pl.BlockSpec((block_rows, LANES), in_map),
            ],
            out_specs=pl.BlockSpec((SUBLANES, LANES), lambda c, k: (c, 0)),
        ),
        compiler_params=pltpu.CompilerParams(
            dimension_semantics=dim_sems,
            vmem_limit_bytes=VMEM_LIMIT_BYTES,
        ),
        cost_estimate=pl.CostEstimate(
            flops=6 * n_main,
            transcendentals=2 * n_main,
            bytes_accessed=n_main * (x2.dtype.itemsize + t2.dtype.itemsize)
            + num_cores * SUBLANES * LANES * 4,
        ),
    )(x2, t2)

    # Tiny finalize in plain JAX: combine per-core lane/sublane partials (+ ragged
    # tail), take the mean (reduction='mean'), then apply the focal transform.
    bce_sum = jnp.sum(partials)
    if n_main != n:
        bce_sum = bce_sum + _bce_logits_sum(x[n_main:], t[n_main:])
    return _focal_from_bce_sum(bce_sum, n, alpha, beta)


def _focal_loss_ref(inputs, targets, alpha=0.8, beta=2.0):
    """Pure-JAX reference mirroring the PyTorch module (sigmoid -> clamped-log BCE)."""
    p = jax.nn.sigmoid(inputs.reshape(-1).astype(jnp.float32))
    t = targets.reshape(-1).astype(jnp.float32)
    log_p = jnp.maximum(jnp.log(p), -100.0)
    log_1mp = jnp.maximum(jnp.log(1.0 - p), -100.0)
    bce = jnp.mean(-(t * log_p + (1.0 - t) * log_1mp))
    return alpha * (1.0 - jnp.exp(-bce)) ** beta * bce


if __name__ == "__main__":
    key = jax.random.PRNGKey(0)
    k_x, k_t = jax.random.split(key)

    # NCHW, matching a typical segmentation logits tensor.
    x = jax.random.normal(k_x, (2, 4, 16, 16), dtype=jnp.float32)
    t = (jax.random.uniform(k_t, (2, 4, 16, 16)) > 0.5).astype(jnp.float32)

    loss = focal_loss(x, t)
    jax.block_until_ready(loss)

    ref = _focal_loss_ref(x, t)
    assert jnp.allclose(loss, ref, rtol=1e-5, atol=1e-5), (loss, ref)

    print("KERNEL_OK")
</pallas_src>

<mosaic_0001>
module attributes {stable_mosaic.version = 11 : i64} {
  func.func @_focal_kernel(%arg0: i32, %arg1: i32, %arg2: memref<16x128xf32, #tpu.memory_space<vmem>>, %arg3: memref<16x128xf32, #tpu.memory_space<vmem>>, %arg4: memref<8x128xf32, #tpu.memory_space<vmem>>) attributes {dimension_semantics = [#tpu.dimension_semantics<arbitrary>, #tpu.dimension_semantics<arbitrary>], iteration_bounds = array<i64: 1, 1>, scalar_prefetch = 0 : i64, scratch_operands = 0 : i64, tpu.core_type = #tpu.core_type<tc>, window_params = [{transform_indices = @transform_0, window_bounds = array<i64: 16, 128>}, {transform_indices = @transform_1, window_bounds = array<i64: 16, 128>}, {transform_indices = @transform_2, window_bounds = array<i64: 8, 128>}]} {
    %c0_i32 = arith.constant 0 : i32
    %0 = arith.cmpi eq, %arg1, %c0_i32 : i32
    %1 = arith.extui %0 : i1 to i32
    %c0_i32_0 = arith.constant 0 : i32
    %2 = arith.cmpi ne, %1, %c0_i32_0 : i32
    scf.if %2 {
      %cst_10 = arith.constant 0.000000e+00 : f32
      %27 = vector.broadcast %cst_10 : f32 to vector<8x128xf32>
      %c0_11 = arith.constant 0 : index
      %c0_12 = arith.constant 0 : index
      %28 = vector.load %arg4[%c0_11, %c0_12] : memref<8x128xf32, #tpu.memory_space<vmem>>, vector<8x128xf32>
      tpu.vector_store %arg4[%c0_11, %c0_12], %27 {strides = array<i32>} : memref<8x128xf32, #tpu.memory_space<vmem>>, vector<8x128xf32>,
    } else {
    }
    %c0 = arith.constant 0 : index
    %c0_1 = arith.constant 0 : index
    %3 = vector.load %arg2[%c0, %c0_1] : memref<16x128xf32, #tpu.memory_space<vmem>>, vector<16x128xf32>
    %c0_2 = arith.constant 0 : index
    %c0_3 = arith.constant 0 : index
    %4 = vector.load %arg3[%c0_2, %c0_3] : memref<16x128xf32, #tpu.memory_space<vmem>>, vector<16x128xf32>
    %cst = arith.constant 0.000000e+00 : f32
    %5 = vector.broadcast %cst : f32 to vector<16x128xf32>
    %6 = arith.maximumf %3, %5 : vector<16x128xf32>
    %7 = arith.mulf %3, %4 : vector<16x128xf32>
    %8 = arith.subf %6, %7 : vector<16x128xf32>
    %9 = math.absf %3 : vector<16x128xf32>
    %cst_4 = arith.constant 0.000000e+00 : f32
    %10 = vector.broadcast %cst_4 : f32 to vector<16x128xf32>
    %11 = arith.subf %10, %9 : vector<16x128xf32>
    %12 = math.exp %11 : vector<16x128xf32>
    %cst_5 = arith.constant 1.000000e+00 : f32
    %13 = vector.broadcast %cst_5 : f32 to vector<16x128xf32>
    %14 = arith.addf %13, %12 : vector<16x128xf32>
    %15 = math.log %14 : vector<16x128xf32>
    %16 = arith.addf %8, %15 : vector<16x128xf32>
    %c1_i32 = arith.constant 1 : i32
    %17 = arith.muli %arg0, %c1_i32 : i32
    %18 = arith.addi %17, %arg1 : i32
    %c1_i32_6 = arith.constant 1 : i32
    %19 = arith.addi %18, %c1_i32_6 : i32
    %c16_i32 = arith.constant 16 : i32
    %20 = arith.muli %19, %c16_i32 : i32
    %c16_i32_7 = arith.constant 16 : i32
    %21 = arith.cmpi sgt, %20, %c16_i32_7 : i32
    %true = arith.constant true
    %22 = arith.xori %21, %true : i1
    %23 = arith.extui %22 : i1 to i32
    %c0_i32_8 = arith.constant 0 : i32
    %24 = arith.cmpi ne, %23, %c0_i32_8 : i32
    scf.if %24 {
      %c0_10 = arith.constant 0 : index
      %c0_11 = arith.constant 0 : index
      %27 = vector.load %arg4[%c0_10, %c0_11] : memref<8x128xf32, #tpu.memory_space<vmem>>, vector<8x128xf32>
      %28 = vector.shape_cast %16 : vector<16x128xf32> to vector<2x8x128xf32>
      %cst_12 = arith.constant dense<0.000000e+00> : vector<8x128xf32>
      %29 = vector.multi_reduction <add>, %28, %cst_12 [0] : vector<2x8x128xf32> to vector<8x128xf32>
      %30 = arith.addf %27, %29 : vector<8x128xf32>
      %c0_13 = arith.constant 0 : index
      %c0_14 = arith.constant 0 : index
      %31 = vector.load %arg4[%c0_13, %c0_14] : memref<8x128xf32, #tpu.memory_space<vmem>>, vector<8x128xf32>
      tpu.vector_store %arg4[%c0_13, %c0_14], %30 {strides = array<i32>} : memref<8x128xf32, #tpu.memory_space<vmem>>, vector<8x128xf32>,
    } else {
    }
    %25 = arith.extui %21 : i1 to i32
    %c0_i32_9 = arith.constant 0 : i32
    %26 = arith.cmpi ne, %25, %c0_i32_9 : i32
    scf.if %26 {
      %27 = tpu.iota {dimensions = array<i32: 0>} : vector<16x128xi32>
      %c16_i32_10 = arith.constant 16 : i32
      %28 = arith.muli %18, %c16_i32_10 : i32
      %29 = vector.broadcast %28 : i32 to vector<16x128xi32>
      %30 = arith.addi %27, %29 : vector<16x128xi32>
      %c16_i32_11 = arith.constant 16 : i32
      %31 = vector.broadcast %c16_i32_11 : i32 to vector<16x128xi32>
      %32 = arith.cmpi slt, %30, %31 : vector<16x128xi32>
      %cst_12 = arith.constant 0.000000e+00 : f32
      %33 = vector.broadcast %cst_12 : f32 to vector<16x128xf32>
      %34 = arith.select %32, %16, %33 : vector<16x128xi1>, vector<16x128xf32>
      %c0_13 = arith.constant 0 : index
      %c0_14 = arith.constant 0 : index
      %35 = vector.load %arg4[%c0_13, %c0_14] : memref<8x128xf32, #tpu.memory_space<vmem>>, vector<8x128xf32>
      %36 = vector.shape_cast %34 : vector<16x128xf32> to vector<2x8x128xf32>
      %cst_15 = arith.constant dense<0.000000e+00> : vector<8x128xf32>
      %37 = vector.multi_reduction <add>, %36, %cst_15 [0] : vector<2x8x128xf32> to vector<8x128xf32>
      %38 = arith.addf %35, %37 : vector<8x128xf32>
      %c0_16 = arith.constant 0 : index
      %c0_17 = arith.constant 0 : index
      %39 = vector.load %arg4[%c0_16, %c0_17] : memref<8x128xf32, #tpu.memory_space<vmem>>, vector<8x128xf32>
      tpu.vector_store %arg4[%c0_16, %c0_17], %38 {strides = array<i32>} : memref<8x128xf32, #tpu.memory_space<vmem>>, vector<8x128xf32>,
    } else {
    }
    return
  }
  func.func @transform_0(%arg0: i32, %arg1: i32) -> (i32, i32) {
    %c1_i32 = arith.constant 1 : i32
    %0 = arith.muli %arg0, %c1_i32 : i32
    %1 = arith.addi %0, %arg1 : i32
    %c0_i32 = arith.constant 0 : i32
    %2 = arith.minsi %1, %c0_i32 : i32
    %c0_i32_0 = arith.constant 0 : i32
    %c0_i32_1 = arith.constant 0 : i32
    return %2, %c0_i32_0 : i32, i32
  }
  func.func @transform_1(%arg0: i32, %arg1: i32) -> (i32, i32) {
    %c1_i32 = arith.constant 1 : i32
    %0 = arith.muli %arg0, %c1_i32 : i32
    %1 = arith.addi %0, %arg1 : i32
    %c0_i32 = arith.constant 0 : i32
    %2 = arith.minsi %1, %c0_i32 : i32
    %c0_i32_0 = arith.constant 0 : i32
    %c0_i32_1 = arith.constant 0 : i32
    return %2, %c0_i32_0 : i32, i32
  }
  func.func @transform_2(%arg0: i32, %arg1: i32) -> (i32, i32) {
    %c0_i32 = arith.constant 0 : i32
    %c0_i32_0 = arith.constant 0 : i32
    return %arg0, %c0_i32 : i32, i32
  }
}

</mosaic_0001>

<bundles_post_ra>
// kernel: tpu_custom_call.1
= control target key start
LH: loop header
LB: loop body
LE: loop exit
PB: predicated region body
PF: predicated region fallthrough
CT: control target
= control target key end

     0   :  { %7 = vsyncpa [#allocation3], 0  ;;  %s283_s0 = inlined_call_operand.hbm [shape: f32[16,128], index: 0, kind: input, shape index: {}]   ;;  %s284_s1 = inlined_call_operand.hbm [shape: f32[16,128], index: 1, kind: input, shape index: {}]   ;;  %s285_s2 = inlined_call_operand.hbm [shape: f32[8,128], index: 2, kind: output, shape index: {}]  }
   0x1   :  { %8 = vsyncpa [#allocation6], 0 }
   0x2   :  { %9 = vsyncpa [#allocation4], 0  ;;  %s227_s9 = smov [#allocation2]   ;;  %s155_s13 = scalar_lea.hbm %s283_s0, 256 }
   0x3   :  { %s21_s10 = sshll.u32 %s227_s9, 4  ;;  %p156_p0 = scmp.ne.s32.totalorder %s283_s0, %s155_s13  ;;  %s22_s10 = int_to_ptr.vmem [resolvable:$true] %s21_s10 }
   0x4   :  { %p159_p1 = scmp.lt.u32.totalorder %s155_s13, %s283_s0 }
   0x6   :  { %p161_p2 = pnand %p159_p1, %p156_p0 }
   0x8   :  { %164 = shalt.err (!%p161_p2)
}
   0x9   :  { %s165_s18 = scalar_lea.vmem %s22_s10, 256  ;;  %p170_p4 = scmp.lt.s32.totalorder %s22_s10, %s22_s10 }
   0xa   :  { %p166_p3 = scmp.ne.s32.totalorder %s22_s10, %s165_s18  ;;  %p171_p5 = scmp.lt.s32.totalorder %s165_s18, %s165_s18 }
   0xc   :  { %p172_p6 = por %p171_p5, %p170_p4 }
   0xe   :  { %p173_p7 = pnand %p172_p6, %p166_p3 }
  0x10   :  { %176 = shalt.err (!%p173_p7)
}
  0x11   :  { %s228_s19 = smov 128   ;;  %s229_s20 = smov 8  }
  0x12   :  { %27 = dma.hbm_to_vmem [thread:$0]  %s283_s0, 256, %s22_s10, [#allocation3], %s228_s19, %s228_s19, %s229_s20  }
  0x13   :  { %s230_s23 = smov [#allocation5]   ;;  %s177_s27 = scalar_lea.hbm %s284_s1, 256 }
  0x14   :  { %s39_s24 = sshll.u32 %s230_s23, 4  ;;  %p178_p8 = scmp.ne.s32.totalorder %s284_s1, %s177_s27  ;;  %s40_s24 = int_to_ptr.vmem [resolvable:$true] %s39_s24 }
  0x15   :  { %p181_p9 = scmp.lt.u32.totalorder %s177_s27, %s284_s1 }
  0x17   :  { %p183_p10 = pnand %p181_p9, %p178_p8 }
  0x19   :  { %186 = shalt.err (!%p183_p10)
}
  0x1a   :  { %s187_s4 = scalar_lea.vmem %s40_s24, 256  ;;  %p192_p12 = scmp.lt.s32.totalorder %s40_s24, %s40_s24 }
  0x1b   :  { %p188_p11 = scmp.ne.s32.totalorder %s40_s24, %s187_s4  ;;  %p193_p13 = scmp.lt.s32.totalorder %s187_s4, %s187_s4 }
  0x1d   :  { %p194_p0 = por %p193_p13, %p192_p12 }
  0x1f   :  { %p195_p1 = pnand %p194_p0, %p188_p11 }
  0x21   :  { %198 = shalt.err (!%p195_p1)
}
  0x22   :  { %45 = dma.hbm_to_vmem [thread:$0]  %s284_s1, 256, %s40_s24, [#allocation6], %s228_s19, %s228_s19, %s229_s20  }
  0x23   :  { %221 = dma.done.wait [#allocation3], 256  }
  0x24   :  { %222 = vsyncadd [#allocation3], 4294967040 }
  0x25   :  { %223 = dma.done.wait [#allocation6], 256  }
  0x26   :  { %224 = vsyncadd [#allocation6], 4294967040  ;;  %v65_v0 = vld [vmem:[#allocation2] sm:$0xff]  ;;  %v66_v1 = vld [vmem:[#allocation2 + $0x8] sm:$0xff]  ;;  %s231_s1 = smov [#allocation7]  }
  0x27   :  { %v75_v2 = vand.u32 2147483647, %v65_v0  ;;  %v76_v3 = vand.u32 2147483647, %v66_v1  ;;  %v67_v12 = vld [vmem:[#allocation5] sm:$0xff]  ;;  %v68_v13 = vld [vmem:[#allocation5 + $0x8] sm:$0xff] }
  0x28   :  { %v69_v14 = vmax.f32 %v65_v0, 0.0  ;;  %v71_v15 = vmul.f32 %v67_v12, %v65_v0  ;;  %v70_v16 = vmax.f32 %v66_v1, 0.0  ;;  %v72_v17 = vmul.f32 %v68_v13, %v66_v1  ;;  %s127_s6 = sshll.u32 %s231_s1, 4  ;;  %s128_s6 = int_to_ptr.vmem [resolvable:$true] %s127_s6 }
  0x29   :  { %v77_v4 = vsub.f32 0.0, %v75_v2  ;;  %v78_v5 = vsub.f32 0.0, %v76_v3  ;;  %s199_s7 = scalar_lea.vmem %s128_s6, 128  ;;  %p204_p3 = scmp.lt.s32.totalorder %s128_s6, %s128_s6 }
  0x2a   :  { %v73_v18 = vsub.f32 %v69_v14, %v71_v15  ;;  %v74_v20 = vsub.f32 %v70_v16, %v72_v17  ;;  %p200_p2 = scmp.ne.s32.totalorder %s128_s6, %s199_s7  ;;  %p205_p4 = scmp.lt.s32.totalorder %s199_s7, %s199_s7 }
  0x2b   :  { %v79_v6 = vmul.f32 1.442695, %v77_v4  ;;  %v81_v7 = vmul.f32 1.442695, %v78_v5 }
  0x2c   :  { %p206_p5 = por %p205_p4, %p204_p3 }
  0x2d   :  { %147 = vpow2.f32 %v79_v6 }
  0x2e   :  { %149 = vpow2.f32 %v81_v7  ;;  %p207_p6 = pnand %p206_p5, %p200_p2 }
  0x37   :  { %v148_v8 = vpop.eup %147 }
  0x38   :  { %v150_v9 = vpop.eup %149  ;;  %v83_v10 = vadd.f32 1.0, %v148_v8 }
  0x39   :  { %v84_v11 = vadd.f32 1.0, %v150_v9 }
  0x3a   :  { %151 = vlog2.f32 %v83_v10 }
  0x3b   :  { %153 = vlog2.f32 %v84_v11 }
  0x44   :  { %v152_v19 = vpop.eup %151 }
  0x45   :  { %v154_v21 = vpop.eup %153  ;;  %v86_v22 = vmul.f32 0.6931472, %v152_v19 }
  0x46   :  { %v88_v23 = vmul.f32 0.6931472, %v154_v21 }
  0x47   :  { %v89_v24 = vadd.f32 %v86_v22, %v73_v18 }
  0x48   :  { %v90_v25 = vadd.f32 %v88_v23, %v74_v20 }
  0x4a   :  { %v100_v26 = vadd.f32 %v90_v25, %v89_v24 }
  0x4c   :  { %102 = vst [vmem:[#allocation7] sm:$0xff] %v100_v26 }
  0x4d   :  { %210 = shalt.err (!%p207_p6)
}
  0x4e   :  { %s211_s10 = scalar_lea.hbm %s285_s2, 128 }
  0x4f   :  { %p212_p7 = scmp.ne.s32.totalorder %s285_s2, %s211_s10  ;;  %p215_p8 = scmp.lt.u32.totalorder %s211_s10, %s285_s2 }
  0x51   :  { %p217_p9 = pnand %p215_p8, %p212_p7 }
  0x53   :  { %220 = shalt.err (!%p217_p9)
}
  0x54   :  { %130 = dma.vmem_to_hbm [thread:$0]  %s128_s6, 128, %s285_s2, [#allocation4]  }
  0x55   :  { %225 = dma.done.wait [#allocation4], 128  }
  0x56   :  { %226 = vsyncadd [#allocation4], 4294967168 }
  0x57   :  { %134 = vsyncpa [#allocation3], 1 }
  0x58   :  { %135 = vsyncpa [#allocation6], 1 }
  0x59   :  { %136 = vsyncpa [#allocation4], 1 }

</bundles_post_ra>
